<compile_context>
chip_gen: v7x
topology: tpu7x:2x2x1
jax: 0.10.0
libtpu: 0.0.40
codegen_flags: <defaults>
</compile_context>

<pallas_src>
import numpy as np
import jax
import jax.numpy as jnp
from jax import lax
from jax.experimental import pallas as pl
from jax.experimental.pallas import tpu as pltpu  # noqa: F401  (TPU backend namespace)

# ---- model hyperparameters (emb_size is a module-level global in the original) ----
EMB_SIZE = 32
HEAD_NUM = 4
HEAD_DIM = EMB_SIZE // HEAD_NUM          # 8
SEQ_LEN = 8
BATCH = 2
# PyTorch does `/ int(k.shape[-1] ** 0.5)`  ->  int(sqrt(8)) == 2
SCALE = 1.0 / float(int(HEAD_DIM ** 0.5))
LN_EPS = 1e-5
MASK_FILL = 1e-9                          # masked_fill_ value used in the reference


def mha_kernel(x_ref, mask_ref, wqkv_ref, vec_ref, o_ref):
    B, S, E = x_ref.shape
    H, Dh = HEAD_NUM, HEAD_DIM

    x = x_ref[...].astype(jnp.float32)                      # (B, S, E)
    vec = vec_ref[...].astype(jnp.float32)                  # (3, 3E): [b_qkv; gamma,0; beta,0]

    # ---- fused Q/K/V projection: one (B*S, E) @ (E, 3E) MXU matmul ----
    # (2,8,E) <-> (16,E) reshapes only regroup leading dims (second-minor == 8 ==
    # sublane tile), so they are layout no-ops.
    xf = x.reshape(B * S, E)
    qkv = jnp.dot(xf, wqkv_ref[...].astype(jnp.float32),
                  preferred_element_type=jnp.float32) + vec[0:1, :]
    qkv = qkv.reshape(B, S, 3 * E)
    q = qkv[:, :, 0 * E:1 * E]
    k = qkv[:, :, 1 * E:2 * E]
    v = qkv[:, :, 2 * E:3 * E]

    # ---- combined mask, built once (single invocation, no per-step rebuild) ----
    # padding mask broadcasts over keys per query row; look-ahead mask = triu(ones,1)
    pad = mask_ref[...] > 0                                 # (B, S, 1) bool
    row = lax.broadcasted_iota(jnp.int32, (S, S), 0)
    col = lax.broadcasted_iota(jnp.int32, (S, S), 1)
    causal = (col > row)[None, :, :]                        # (1, S, S)
    full_mask = jnp.logical_or(pad, causal)                 # (B, S, S)

    # ---- per-head attention: heads are static lane slices, dots batched over B ----
    for h in range(H):
        lo = h * Dh
        hi = lo + Dh
        qh = q[:, :, lo:hi]                                 # (B, S, Dh)
        kh = k[:, :, lo:hi]
        vh = v[:, :, lo:hi]
        # Batched QK^T without materializing a transpose (contract on Dh).
        s = jnp.einsum('bqd,bkd->bqk', qh, kh,
                       preferred_element_type=jnp.float32) * SCALE
        # NOTE: the reference masked_fill_'s with 1e-9 (NOT -inf); reproduce that.
        s = jnp.where(full_mask, MASK_FILL, s)
        # Softmax with the divide moved to the EUP via approximate reciprocal.
        s = s - jnp.max(s, axis=-1, keepdims=True)
        p = jnp.exp(s)
        denom = jnp.sum(p, axis=-1, keepdims=True)
        p = p * pl.reciprocal(denom, approx=True)
        oh = jnp.einsum('bqk,bkd->bqd', p, vh,
                        preferred_element_type=jnp.float32)  # (B, S, Dh)
        # Write the head output straight into its feature slice (== transpose(1,2)
        # + reshape head-concat), instead of a lane concatenate.
        o_ref[:, :, lo:hi] = oh.astype(o_ref.dtype)

    # ---- residual + LayerNorm over the last dim (biased variance, eps=1e-5) ----
    y = o_ref[...].astype(jnp.float32) + x
    mean = jnp.mean(y, axis=-1, keepdims=True)
    var = jnp.mean((y - mean) ** 2, axis=-1, keepdims=True)
    yn = (y - mean) * lax.rsqrt(var + LN_EPS)
    gamma = vec[1:2, 0:E].reshape(1, 1, E)
    beta = vec[2:3, 0:E].reshape(1, 1, E)
    o_ref[...] = (yn * gamma + beta).astype(o_ref.dtype)


def multi_head_attention(x, attention_mask,
                         wq_t, bq, wk_t, bk, wv_t, bv, gamma, beta):
    B, S, E = x.shape
    # One-time parameter fusion (in a real model do this once at parameter-load
    # time): Q/K/V weights -> (E, 3E); all five (1,E)/(1,3E) vectors -> one (3, 3E)
    # array so they travel in a single DMA / single VMEM tile.
    w_qkv = jnp.concatenate([wq_t, wk_t, wv_t], axis=1)                    # (E, 3E)
    b_qkv = jnp.concatenate(
        [bq.reshape(1, E), bk.reshape(1, E), bv.reshape(1, E)], axis=1)    # (1, 3E)
    vec = jnp.zeros((3, 3 * E), jnp.float32)
    vec = vec.at[0:1, :].set(b_qkv)
    vec = vec.at[1:2, 0:E].set(gamma.reshape(1, E))
    vec = vec.at[2:3, 0:E].set(beta.reshape(1, E))

    # No grid: the whole problem fits in a couple of vregs; a grid would only add
    # per-step pipeline overhead (the kernel is latency-bound, not compute-bound).
    return pl.pallas_call(
        mha_kernel,
        out_shape=jax.ShapeDtypeStruct((B, S, E), x.dtype),
        in_specs=[
            pl.BlockSpec((B, S, E), lambda *_: (0, 0, 0)),    # x
            pl.BlockSpec((B, S, 1), lambda *_: (0, 0, 0)),    # attention_mask
            pl.BlockSpec((E, 3 * E), lambda *_: (0, 0)),      # fused W_qkv (pre-transposed)
            pl.BlockSpec((3, 3 * E), lambda *_: (0, 0)),      # stacked [b_qkv; gamma; beta]
        ],
        out_specs=pl.BlockSpec((B, S, E), lambda *_: (0, 0, 0)),
    )(x, attention_mask, w_qkv, vec)


def reference_forward(x, mask, wq_t, bq, wk_t, bk, wv_t, bv, gamma, beta):
    """Pure-JAX mirror of the PyTorch forward, for correctness checking."""
    B, S, E = x.shape
    q = x @ wq_t + bq
    k = x @ wk_t + bk
    v = x @ wv_t + bv
    q = q.reshape(B, S, HEAD_NUM, HEAD_DIM).transpose(0, 2, 1, 3)
    k = k.reshape(B, S, HEAD_NUM, HEAD_DIM).transpose(0, 2, 1, 3)
    v = v.reshape(B, S, HEAD_NUM, HEAD_DIM).transpose(0, 2, 1, 3)
    w = jnp.einsum("bhqd,bhkd->bhqk", q, k) * SCALE
    pad = (mask[:, None, :, :] > 0)                       # (B,1,S,1)
    pad = jnp.broadcast_to(pad, (B, HEAD_NUM, S, S))
    causal = jnp.triu(jnp.ones((S, S), dtype=bool), 1)[None, None]
    full_mask = jnp.logical_or(pad, causal)
    w = jnp.where(full_mask, MASK_FILL, w)
    w = jax.nn.softmax(w, axis=-1)
    o = jnp.einsum("bhqk,bhkd->bhqd", w, v)
    o = o.transpose(0, 2, 1, 3).reshape(B, S, E)
    y = o + x
    mean = jnp.mean(y, axis=-1, keepdims=True)
    var = jnp.mean((y - mean) ** 2, axis=-1, keepdims=True)
    return (y - mean) / jnp.sqrt(var + LN_EPS) * gamma + beta


if __name__ == "__main__":
    key = jax.random.PRNGKey(0)
    ks = jax.random.split(key, 9)

    # Deterministic synthetic parameters (PyTorch Linear weight is (out,in);
    # we store the transposed (in,out) version for x @ W^T + b).
    wq_t = jax.random.normal(ks[0], (EMB_SIZE, EMB_SIZE), jnp.float32) * 0.1
    wk_t = jax.random.normal(ks[1], (EMB_SIZE, EMB_SIZE), jnp.float32) * 0.1
    wv_t = jax.random.normal(ks[2], (EMB_SIZE, EMB_SIZE), jnp.float32) * 0.1
    bq = jax.random.normal(ks[3], (1, EMB_SIZE), jnp.float32) * 0.1
    bk = jax.random.normal(ks[4], (1, EMB_SIZE), jnp.float32) * 0.1
    bv = jax.random.normal(ks[5], (1, EMB_SIZE), jnp.float32) * 0.1
    gamma = jnp.ones((1, EMB_SIZE), jnp.float32)          # LayerNorm weight
    beta = jnp.zeros((1, EMB_SIZE), jnp.float32)          # LayerNorm bias

    x = jax.random.normal(ks[6], (BATCH, SEQ_LEN, EMB_SIZE), jnp.float32)
    # Padding mask: 1 = padded (masked) query position.
    mask = (jax.random.uniform(ks[7], (BATCH, SEQ_LEN, 1)) > 0.75).astype(jnp.int32)

    out = multi_head_attention(x, mask, wq_t, bq, wk_t, bk, wv_t, bv, gamma, beta)
    out = jax.block_until_ready(out)

    ref = jax.block_until_ready(
        reference_forward(x, mask, wq_t, bq, wk_t, bk, wv_t, bv, gamma, beta))
    # Tolerance covers the EUP approximate-reciprocal softmax normalization
    # (relative error ~2^-12); genuine layout/semantic bugs would be O(0.1-1).
    np.testing.assert_allclose(np.asarray(out), np.asarray(ref), rtol=5e-3, atol=5e-3)

    print("KERNEL_OK")
</pallas_src>

<mosaic_0001>
module attributes {stable_mosaic.version = 11 : i64} {
  func.func @mha_kernel(%arg0: memref<2x8x32xf32, #tpu.memory_space<vmem>>, %arg1: memref<2x8x1xi32, #tpu.memory_space<vmem>>, %arg2: memref<32x96xf32, #tpu.memory_space<vmem>>, %arg3: memref<3x96xf32, #tpu.memory_space<vmem>>, %arg4: memref<2x8x32xf32, #tpu.memory_space<vmem>>) attributes {dimension_semantics = [], scalar_prefetch = 0 : i64, scratch_operands = 0 : i64, tpu.core_type = #tpu.core_type<tc>} {
    %c0 = arith.constant 0 : index
    %c0_0 = arith.constant 0 : index
    %c0_1 = arith.constant 0 : index
    %0 = vector.load %arg0[%c0, %c0_0, %c0_1] : memref<2x8x32xf32, #tpu.memory_space<vmem>>, vector<2x8x32xf32>
    %c0_2 = arith.constant 0 : index
    %c0_3 = arith.constant 0 : index
    %1 = vector.load %arg3[%c0_2, %c0_3] : memref<3x96xf32, #tpu.memory_space<vmem>>, vector<3x96xf32>
    %2 = vector.shape_cast %0 : vector<2x8x32xf32> to vector<16x32xf32>
    %c0_4 = arith.constant 0 : index
    %c0_5 = arith.constant 0 : index
    %3 = vector.load %arg2[%c0_4, %c0_5] : memref<32x96xf32, #tpu.memory_space<vmem>>, vector<32x96xf32>
    %cst = arith.constant dense<0.000000e+00> : vector<16x96xf32>
    %4 = tpu.matmul %2, %3, %cst {dimension_numbers = #tpu.dot_dimension_numbers<[1], [0], [0], [1], [0, 0, 1, 1], [], []>} : vector<16x32xf32>, vector<32x96xf32>, vector<16x96xf32> -> vector<16x96xf32>
    %5 = vector.extract_strided_slice %1 {offsets = [0, 0], sizes = [1, 96], strides = [1, 1]} : vector<3x96xf32> to vector<1x96xf32>
    %6 = vector.broadcast %5 : vector<1x96xf32> to vector<16x96xf32>
    %7 = arith.addf %4, %6 : vector<16x96xf32>
    %8 = vector.shape_cast %7 : vector<16x96xf32> to vector<2x8x96xf32>
    %9 = vector.extract_strided_slice %8 {offsets = [0, 0, 0], sizes = [2, 8, 32], strides = [1, 1, 1]} : vector<2x8x96xf32> to vector<2x8x32xf32>
    %10 = vector.extract_strided_slice %8 {offsets = [0, 0, 32], sizes = [2, 8, 32], strides = [1, 1, 1]} : vector<2x8x96xf32> to vector<2x8x32xf32>
    %11 = vector.extract_strided_slice %8 {offsets = [0, 0, 64], sizes = [2, 8, 32], strides = [1, 1, 1]} : vector<2x8x96xf32> to vector<2x8x32xf32>
    %c0_6 = arith.constant 0 : index
    %c0_7 = arith.constant 0 : index
    %c0_8 = arith.constant 0 : index
    %12 = vector.load %arg1[%c0_6, %c0_7, %c0_8] : memref<2x8x1xi32, #tpu.memory_space<vmem>>, vector<2x8x1xi32>
    %c0_i32 = arith.constant 0 : i32
    %13 = vector.broadcast %c0_i32 : i32 to vector<2x8x1xi32>
    %14 = arith.cmpi sgt, %12, %13 : vector<2x8x1xi32>
    %15 = tpu.iota {dimensions = array<i32: 0>} : vector<8x8xi32>
    %16 = tpu.iota {dimensions = array<i32: 1>} : vector<8x8xi32>
    %17 = arith.cmpi sgt, %16, %15 : vector<8x8xi32>
    %18 = vector.shape_cast %17 : vector<8x8xi1> to vector<1x8x8xi1>
    %19 = vector.broadcast %14 : vector<2x8x1xi1> to vector<2x8x8xi1>
    %20 = vector.broadcast %18 : vector<1x8x8xi1> to vector<2x8x8xi1>
    %21 = arith.ori %19, %20 : vector<2x8x8xi1>
    %22 = vector.extract_strided_slice %9 {offsets = [0, 0, 0], sizes = [2, 8, 8], strides = [1, 1, 1]} : vector<2x8x32xf32> to vector<2x8x8xf32>
    %23 = vector.extract_strided_slice %10 {offsets = [0, 0, 0], sizes = [2, 8, 8], strides = [1, 1, 1]} : vector<2x8x32xf32> to vector<2x8x8xf32>
    %24 = vector.extract_strided_slice %11 {offsets = [0, 0, 0], sizes = [2, 8, 8], strides = [1, 1, 1]} : vector<2x8x32xf32> to vector<2x8x8xf32>
    "tpu.trace_start"() <{level = 10 : i32, message = "bqd,bkd->bqk"}> : () -> ()
    %cst_9 = arith.constant dense<0.000000e+00> : vector<2x8x8xf32>
    %25 = tpu.matmul %22, %23, %cst_9 {dimension_numbers = #tpu.dot_dimension_numbers<[2], [2], [1], [1], [0, 0, 0, 1, 1, 1], [0], [0]>} : vector<2x8x8xf32>, vector<2x8x8xf32>, vector<2x8x8xf32> -> vector<2x8x8xf32>
    "tpu.trace_stop"() : () -> ()
    %cst_10 = arith.constant 5.000000e-01 : f32
    %26 = vector.broadcast %cst_10 : f32 to vector<2x8x8xf32>
    %27 = arith.mulf %25, %26 : vector<2x8x8xf32>
    %cst_11 = arith.constant 9.99999971E-10 : f32
    %28 = vector.broadcast %cst_11 : f32 to vector<2x8x8xf32>
    %29 = arith.select %21, %28, %27 : vector<2x8x8xi1>, vector<2x8x8xf32>
    %cst_12 = arith.constant dense<0xFF800000> : vector<2x8xf32>
    %30 = vector.multi_reduction <maximumf>, %29, %cst_12 [2] : vector<2x8x8xf32> to vector<2x8xf32>
    %31 = vector.shape_cast %30 : vector<2x8xf32> to vector<2x8x1xf32>
    %32 = vector.broadcast %31 : vector<2x8x1xf32> to vector<2x8x8xf32>
    %33 = arith.subf %29, %32 : vector<2x8x8xf32>
    %34 = math.exp %33 : vector<2x8x8xf32>
    %cst_13 = arith.constant dense<0.000000e+00> : vector<2x8xf32>
    %35 = vector.multi_reduction <add>, %34, %cst_13 [2] : vector<2x8x8xf32> to vector<2x8xf32>
    %36 = vector.shape_cast %35 : vector<2x8xf32> to vector<2x8x1xf32>
    %37 = tpu.reciprocal %36 {approx = true} : vector<2x8x1xf32> -> vector<2x8x1xf32>
    %38 = vector.broadcast %37 : vector<2x8x1xf32> to vector<2x8x8xf32>
    %39 = arith.mulf %34, %38 : vector<2x8x8xf32>
    "tpu.trace_start"() <{level = 10 : i32, message = "bqk,bkd->bqd"}> : () -> ()
    %cst_14 = arith.constant dense<0.000000e+00> : vector<2x8x8xf32>
    %40 = tpu.matmul %39, %24, %cst_14 {dimension_numbers = #tpu.dot_dimension_numbers<[2], [1], [1], [2], [0, 0, 0, 1, 1, 2], [0], [0]>} : vector<2x8x8xf32>, vector<2x8x8xf32>, vector<2x8x8xf32> -> vector<2x8x8xf32>
    "tpu.trace_stop"() : () -> ()
    %c0_15 = arith.constant 0 : index
    %c0_16 = arith.constant 0 : index
    %c0_17 = arith.constant 0 : index
    %41 = vector.load %arg4[%c0_15, %c0_16, %c0_17] : memref<2x8x32xf32, #tpu.memory_space<vmem>>, vector<2x8x8xf32>
    tpu.vector_store %arg4[%c0_15, %c0_16, %c0_17], %40 {strides = array<i32>} : memref<2x8x32xf32, #tpu.memory_space<vmem>>, vector<2x8x8xf32>,
    %42 = vector.extract_strided_slice %9 {offsets = [0, 0, 8], sizes = [2, 8, 8], strides = [1, 1, 1]} : vector<2x8x32xf32> to vector<2x8x8xf32>
    %43 = vector.extract_strided_slice %10 {offsets = [0, 0, 8], sizes = [2, 8, 8], strides = [1, 1, 1]} : vector<2x8x32xf32> to vector<2x8x8xf32>
    %44 = vector.extract_strided_slice %11 {offsets = [0, 0, 8], sizes = [2, 8, 8], strides = [1, 1, 1]} : vector<2x8x32xf32> to vector<2x8x8xf32>
    "tpu.trace_start"() <{level = 10 : i32, message = "bqd,bkd->bqk"}> : () -> ()
    %cst_18 = arith.constant dense<0.000000e+00> : vector<2x8x8xf32>
    %45 = tpu.matmul %42, %43, %cst_18 {dimension_numbers = #tpu.dot_dimension_numbers<[2], [2], [1], [1], [0, 0, 0, 1, 1, 1], [0], [0]>} : vector<2x8x8xf32>, vector<2x8x8xf32>, vector<2x8x8xf32> -> vector<2x8x8xf32>
    "tpu.trace_stop"() : () -> ()
    %cst_19 = arith.constant 5.000000e-01 : f32
    %46 = vector.broadcast %cst_19 : f32 to vector<2x8x8xf32>
    %47 = arith.mulf %45, %46 : vector<2x8x8xf32>
    %cst_20 = arith.constant 9.99999971E-10 : f32
    %48 = vector.broadcast %cst_20 : f32 to vector<2x8x8xf32>
    %49 = arith.select %21, %48, %47 : vector<2x8x8xi1>, vector<2x8x8xf32>
    %cst_21 = arith.constant dense<0xFF800000> : vector<2x8xf32>
    %50 = vector.multi_reduction <maximumf>, %49, %cst_21 [2] : vector<2x8x8xf32> to vector<2x8xf32>
    %51 = vector.shape_cast %50 : vector<2x8xf32> to vector<2x8x1xf32>
    %52 = vector.broadcast %51 : vector<2x8x1xf32> to vector<2x8x8xf32>
    %53 = arith.subf %49, %52 : vector<2x8x8xf32>
    %54 = math.exp %53 : vector<2x8x8xf32>
    %cst_22 = arith.constant dense<0.000000e+00> : vector<2x8xf32>
    %55 = vector.multi_reduction <add>, %54, %cst_22 [2] : vector<2x8x8xf32> to vector<2x8xf32>
    %56 = vector.shape_cast %55 : vector<2x8xf32> to vector<2x8x1xf32>
    %57 = tpu.reciprocal %56 {approx = true} : vector<2x8x1xf32> -> vector<2x8x1xf32>
    %58 = vector.broadcast %57 : vector<2x8x1xf32> to vector<2x8x8xf32>
    %59 = arith.mulf %54, %58 : vector<2x8x8xf32>
    "tpu.trace_start"() <{level = 10 : i32, message = "bqk,bkd->bqd"}> : () -> ()
    %cst_23 = arith.constant dense<0.000000e+00> : vector<2x8x8xf32>
    %60 = tpu.matmul %59, %44, %cst_23 {dimension_numbers = #tpu.dot_dimension_numbers<[2], [1], [1], [2], [0, 0, 0, 1, 1, 2], [0], [0]>} : vector<2x8x8xf32>, vector<2x8x8xf32>, vector<2x8x8xf32> -> vector<2x8x8xf32>
    "tpu.trace_stop"() : () -> ()
    %c0_24 = arith.constant 0 : index
    %c0_25 = arith.constant 0 : index
    %c8 = arith.constant 8 : index
    %61 = vector.load %arg4[%c0_24, %c0_25, %c8] : memref<2x8x32xf32, #tpu.memory_space<vmem>>, vector<2x8x8xf32>
    tpu.vector_store %arg4[%c0_24, %c0_25, %c8], %60 {strides = array<i32>} : memref<2x8x32xf32, #tpu.memory_space<vmem>>, vector<2x8x8xf32>,
    %62 = vector.extract_strided_slice %9 {offsets = [0, 0, 16], sizes = [2, 8, 8], strides = [1, 1, 1]} : vector<2x8x32xf32> to vector<2x8x8xf32>
    %63 = vector.extract_strided_slice %10 {offsets = [0, 0, 16], sizes = [2, 8, 8], strides = [1, 1, 1]} : vector<2x8x32xf32> to vector<2x8x8xf32>
    %64 = vector.extract_strided_slice %11 {offsets = [0, 0, 16], sizes = [2, 8, 8], strides = [1, 1, 1]} : vector<2x8x32xf32> to vector<2x8x8xf32>
    "tpu.trace_start"() <{level = 10 : i32, message = "bqd,bkd->bqk"}> : () -> ()
    %cst_26 = arith.constant dense<0.000000e+00> : vector<2x8x8xf32>
    %65 = tpu.matmul %62, %63, %cst_26 {dimension_numbers = #tpu.dot_dimension_numbers<[2], [2], [1], [1], [0, 0, 0, 1, 1, 1], [0], [0]>} : vector<2x8x8xf32>, vector<2x8x8xf32>, vector<2x8x8xf32> -> vector<2x8x8xf32>
    "tpu.trace_stop"() : () -> ()
    %cst_27 = arith.constant 5.000000e-01 : f32
    %66 = vector.broadcast %cst_27 : f32 to vector<2x8x8xf32>
    %67 = arith.mulf %65, %66 : vector<2x8x8xf32>
    %cst_28 = arith.constant 9.99999971E-10 : f32
    %68 = vector.broadcast %cst_28 : f32 to vector<2x8x8xf32>
    %69 = arith.select %21, %68, %67 : vector<2x8x8xi1>, vector<2x8x8xf32>
    %cst_29 = arith.constant dense<0xFF800000> : vector<2x8xf32>
    %70 = vector.multi_reduction <maximumf>, %69, %cst_29 [2] : vector<2x8x8xf32> to vector<2x8xf32>
    %71 = vector.shape_cast %70 : vector<2x8xf32> to vector<2x8x1xf32>
    %72 = vector.broadcast %71 : vector<2x8x1xf32> to vector<2x8x8xf32>
    %73 = arith.subf %69, %72 : vector<2x8x8xf32>
    %74 = math.exp %73 : vector<2x8x8xf32>
    %cst_30 = arith.constant dense<0.000000e+00> : vector<2x8xf32>
    %75 = vector.multi_reduction <add>, %74, %cst_30 [2] : vector<2x8x8xf32> to vector<2x8xf32>
    %76 = vector.shape_cast %75 : vector<2x8xf32> to vector<2x8x1xf32>
    %77 = tpu.reciprocal %76 {approx = true} : vector<2x8x1xf32> -> vector<2x8x1xf32>
    %78 = vector.broadcast %77 : vector<2x8x1xf32> to vector<2x8x8xf32>
    %79 = arith.mulf %74, %78 : vector<2x8x8xf32>
    "tpu.trace_start"() <{level = 10 : i32, message = "bqk,bkd->bqd"}> : () -> ()
    %cst_31 = arith.constant dense<0.000000e+00> : vector<2x8x8xf32>
    %80 = tpu.matmul %79, %64, %cst_31 {dimension_numbers = #tpu.dot_dimension_numbers<[2], [1], [1], [2], [0, 0, 0, 1, 1, 2], [0], [0]>} : vector<2x8x8xf32>, vector<2x8x8xf32>, vector<2x8x8xf32> -> vector<2x8x8xf32>
    "tpu.trace_stop"() : () -> ()
    %c0_32 = arith.constant 0 : index
    %c0_33 = arith.constant 0 : index
    %c16 = arith.constant 16 : index
    %81 = vector.load %arg4[%c0_32, %c0_33, %c16] : memref<2x8x32xf32, #tpu.memory_space<vmem>>, vector<2x8x8xf32>
    tpu.vector_store %arg4[%c0_32, %c0_33, %c16], %80 {strides = array<i32>} : memref<2x8x32xf32, #tpu.memory_space<vmem>>, vector<2x8x8xf32>,
    %82 = vector.extract_strided_slice %9 {offsets = [0, 0, 24], sizes = [2, 8, 8], strides = [1, 1, 1]} : vector<2x8x32xf32> to vector<2x8x8xf32>
    %83 = vector.extract_strided_slice %10 {offsets = [0, 0, 24], sizes = [2, 8, 8], strides = [1, 1, 1]} : vector<2x8x32xf32> to vector<2x8x8xf32>
    %84 = vector.extract_strided_slice %11 {offsets = [0, 0, 24], sizes = [2, 8, 8], strides = [1, 1, 1]} : vector<2x8x32xf32> to vector<2x8x8xf32>
    "tpu.trace_start"() <{level = 10 : i32, message = "bqd,bkd->bqk"}> : () -> ()
    %cst_34 = arith.constant dense<0.000000e+00> : vector<2x8x8xf32>
    %85 = tpu.matmul %82, %83, %cst_34 {dimension_numbers = #tpu.dot_dimension_numbers<[2], [2], [1], [1], [0, 0, 0, 1, 1, 1], [0], [0]>} : vector<2x8x8xf32>, vector<2x8x8xf32>, vector<2x8x8xf32> -> vector<2x8x8xf32>
    "tpu.trace_stop"() : () -> ()
    %cst_35 = arith.constant 5.000000e-01 : f32
    %86 = vector.broadcast %cst_35 : f32 to vector<2x8x8xf32>
    %87 = arith.mulf %85, %86 : vector<2x8x8xf32>
    %cst_36 = arith.constant 9.99999971E-10 : f32
    %88 = vector.broadcast %cst_36 : f32 to vector<2x8x8xf32>
    %89 = arith.select %21, %88, %87 : vector<2x8x8xi1>, vector<2x8x8xf32>
    %cst_37 = arith.constant dense<0xFF800000> : vector<2x8xf32>
    %90 = vector.multi_reduction <maximumf>, %89, %cst_37 [2] : vector<2x8x8xf32> to vector<2x8xf32>
    %91 = vector.shape_cast %90 : vector<2x8xf32> to vector<2x8x1xf32>
    %92 = vector.broadcast %91 : vector<2x8x1xf32> to vector<2x8x8xf32>
    %93 = arith.subf %89, %92 : vector<2x8x8xf32>
    %94 = math.exp %93 : vector<2x8x8xf32>
    %cst_38 = arith.constant dense<0.000000e+00> : vector<2x8xf32>
    %95 = vector.multi_reduction <add>, %94, %cst_38 [2] : vector<2x8x8xf32> to vector<2x8xf32>
    %96 = vector.shape_cast %95 : vector<2x8xf32> to vector<2x8x1xf32>
    %97 = tpu.reciprocal %96 {approx = true} : vector<2x8x1xf32> -> vector<2x8x1xf32>
    %98 = vector.broadcast %97 : vector<2x8x1xf32> to vector<2x8x8xf32>
    %99 = arith.mulf %94, %98 : vector<2x8x8xf32>
    "tpu.trace_start"() <{level = 10 : i32, message = "bqk,bkd->bqd"}> : () -> ()
    %cst_39 = arith.constant dense<0.000000e+00> : vector<2x8x8xf32>
    %100 = tpu.matmul %99, %84, %cst_39 {dimension_numbers = #tpu.dot_dimension_numbers<[2], [1], [1], [2], [0, 0, 0, 1, 1, 2], [0], [0]>} : vector<2x8x8xf32>, vector<2x8x8xf32>, vector<2x8x8xf32> -> vector<2x8x8xf32>
    "tpu.trace_stop"() : () -> ()
    %c0_40 = arith.constant 0 : index
    %c0_41 = arith.constant 0 : index
    %c24 = arith.constant 24 : index
    %101 = vector.load %arg4[%c0_40, %c0_41, %c24] : memref<2x8x32xf32, #tpu.memory_space<vmem>>, vector<2x8x8xf32>
    tpu.vector_store %arg4[%c0_40, %c0_41, %c24], %100 {strides = array<i32>} : memref<2x8x32xf32, #tpu.memory_space<vmem>>, vector<2x8x8xf32>,
    %c0_42 = arith.constant 0 : index
    %c0_43 = arith.constant 0 : index
    %c0_44 = arith.constant 0 : index
    %102 = vector.load %arg4[%c0_42, %c0_43, %c0_44] : memref<2x8x32xf32, #tpu.memory_space<vmem>>, vector<2x8x32xf32>
    %103 = arith.addf %102, %0 : vector<2x8x32xf32>
    %cst_45 = arith.constant dense<0.000000e+00> : vector<2x8xf32>
    %104 = vector.multi_reduction <add>, %103, %cst_45 [2] : vector<2x8x32xf32> to vector<2x8xf32>
    %105 = vector.shape_cast %104 : vector<2x8xf32> to vector<2x8x1xf32>
    %cst_46 = arith.constant 3.200000e+01 : f32
    %106 = vector.broadcast %cst_46 : f32 to vector<2x8x1xf32>
    %107 = arith.divf %105, %106 : vector<2x8x1xf32>
    %108 = vector.broadcast %107 : vector<2x8x1xf32> to vector<2x8x32xf32>
    %109 = arith.subf %103, %108 : vector<2x8x32xf32>
    %110 = arith.mulf %109, %109 : vector<2x8x32xf32>
    %cst_47 = arith.constant dense<0.000000e+00> : vector<2x8xf32>
    %111 = vector.multi_reduction <add>, %110, %cst_47 [2] : vector<2x8x32xf32> to vector<2x8xf32>
    %112 = vector.shape_cast %111 : vector<2x8xf32> to vector<2x8x1xf32>
    %cst_48 = arith.constant 3.200000e+01 : f32
    %113 = vector.broadcast %cst_48 : f32 to vector<2x8x1xf32>
    %114 = arith.divf %112, %113 : vector<2x8x1xf32>
    %115 = vector.broadcast %107 : vector<2x8x1xf32> to vector<2x8x32xf32>
    %116 = arith.subf %103, %115 : vector<2x8x32xf32>
    %cst_49 = arith.constant 9.99999974E-6 : f32
    %117 = vector.broadcast %cst_49 : f32 to vector<2x8x1xf32>
    %118 = arith.addf %114, %117 : vector<2x8x1xf32>
    %119 = math.rsqrt %118 : vector<2x8x1xf32>
    %120 = vector.broadcast %119 : vector<2x8x1xf32> to vector<2x8x32xf32>
    %121 = arith.mulf %116, %120 : vector<2x8x32xf32>
    %122 = vector.extract_strided_slice %1 {offsets = [1, 0], sizes = [1, 32], strides = [1, 1]} : vector<3x96xf32> to vector<1x32xf32>
    %123 = vector.shape_cast %122 : vector<1x32xf32> to vector<1x1x32xf32>
    %124 = vector.extract_strided_slice %1 {offsets = [2, 0], sizes = [1, 32], strides = [1, 1]} : vector<3x96xf32> to vector<1x32xf32>
    %125 = vector.shape_cast %124 : vector<1x32xf32> to vector<1x1x32xf32>
    %126 = vector.broadcast %123 : vector<1x1x32xf32> to vector<2x8x32xf32>
    %127 = arith.mulf %121, %126 : vector<2x8x32xf32>
    %128 = vector.broadcast %125 : vector<1x1x32xf32> to vector<2x8x32xf32>
    %129 = arith.addf %127, %128 : vector<2x8x32xf32>
    %c0_50 = arith.constant 0 : index
    %c0_51 = arith.constant 0 : index
    %c0_52 = arith.constant 0 : index
    %130 = vector.load %arg4[%c0_50, %c0_51, %c0_52] : memref<2x8x32xf32, #tpu.memory_space<vmem>>, vector<2x8x32xf32>
    tpu.vector_store %arg4[%c0_50, %c0_51, %c0_52], %129 {strides = array<i32>} : memref<2x8x32xf32, #tpu.memory_space<vmem>>, vector<2x8x32xf32>,
    return
  }
}

</mosaic_0001>

<bundles_post_ra>
// kernel: tpu_custom_call.1
= control target key start
LH: loop header
LB: loop body
LE: loop exit
PB: predicated region body
PF: predicated region fallthrough
CT: control target
= control target key end

     0   :  { %9 = vsyncpa [#allocation3], 0  ;;  %s2118_s0 = inlined_call_operand.vmem [shape: f32[2,8,32], index: 0, kind: input, shape index: {}]   ;;  %s2119_s1 = inlined_call_operand.vmem [shape: s32[2,8,1], index: 1, kind: input, shape index: {}]   ;;  %s2120_s2 = inlined_call_operand.hbm [shape: f32[32,96], index: 2, kind: input, shape index: {}]   ;;  %s2121_s3 = inlined_call_operand.vmem [shape: f32[3,96], index: 3, kind: input, shape index: {}]   ;;  %s2122_s4 = inlined_call_operand.hbm [shape: f32[2,8,32], index: 4, kind: output, shape index: {}]  }
   0x1   :  { %10 = vsyncpa [#allocation4], 0  ;;  %s1849_s15 = smov [#allocation2]   ;;  %s1801_s19 = scalar_lea.hbm %s2120_s2, 512 }
   0x2   :  { %s20_s16 = sshll.u32 %s1849_s15, 4  ;;  %p1802_p0 = scmp.ne.s32.totalorder %s2120_s2, %s1801_s19  ;;  %s21_s16 = int_to_ptr.vmem [resolvable:$true] %s20_s16 }
   0x3   :  { %p1805_p1 = scmp.lt.u32.totalorder %s1801_s19, %s2120_s2 }
   0x5   :  { %p1807_p2 = pnand %p1805_p1, %p1802_p0 }
   0x7   :  { %1810 = shalt.err (!%p1807_p2)
}
   0x8   :  { %s1811_s24 = scalar_lea.vmem %s21_s16, 512  ;;  %p1816_p4 = scmp.lt.s32.totalorder %s21_s16, %s21_s16 }
   0x9   :  { %p1812_p3 = scmp.ne.s32.totalorder %s21_s16, %s1811_s24  ;;  %p1817_p5 = scmp.lt.s32.totalorder %s1811_s24, %s1811_s24 }
   0xb   :  { %p1818_p6 = por %p1817_p5, %p1816_p4 }
   0xd   :  { %p1819_p7 = pnand %p1818_p6, %p1812_p3 }
   0xf   :  { %1822 = shalt.err (!%p1819_p7)
}
  0x10   :  { %s1850_s25 = smov 128   ;;  %s1851_s26 = smov 8  }
  0x11   :  { %26 = dma.hbm_to_vmem [thread:$0]  %s2120_s2, 512, %s21_s16, [#allocation3], %s1850_s25, %s1850_s25, %s1851_s26  }
  0x12   :  { %1845 = dma.done.wait [#allocation3], 512  }
  0x13   :  { %1846 = vsyncadd [#allocation3], 4294966784  ;;  %vm43_vm0 = vcmask 261120   ;;  %v35_v0 = vld [vmem:[#allocation2] sm:$0xff]  ;;  %v36_v1 = vld [vmem:[#allocation2 + $0x8] sm:$0xff]  ;;  %v1852_v8 = vmov 0.0   ;;  %v39_v9 = vlaneseq }
  0x14   :  { %v37_v2 = vld [vmem:[#allocation2 + $0x10] sm:$0xff]  ;;  %v1735_v3 = vpack.c.bf16 %v36_v1, %v35_v0  ;;  %v38_v4 = vld [vmem:[#allocation2 + $0x18] sm:$0xff]  ;;  %v1912_v5 = vld [vmem:[%s2118_s0] sm:$0xff]  ;;  %1655 = vmatprep.subr.mxu1 %v1852_v8  ;;  %vm1853_vm1 = vmmov 0   ;;  %v1854_v16 = vmov 0   ;;  %vm151_vm4 = vcmask 64512  }
  0x15   :  { %v1739_v6 = vpack.c.bf16 %v38_v4, %v37_v2  ;;  %1652 = vmatprep.mubr.msk.f32.mxu0 %vm43_vm0, %v1912_v5  ;;  %v1919_v7 = vld [vmem:[%s2118_s0 + $0x8] sm:$0xff]  ;;  %v1925_v10 = vshrl.u32 %v39_v9, 7  ;;  %1657 = vmatprep.mubr.msk.f32.mxu1 %vm1853_vm1, %v1852_v8  ;;  %v1935_v12 = vld [vmem:[%s2121_s3] sm:$0x7]  ;;  %s1855_s3 = smov 96   ;;  %v132_v25 = vand.u32 127, %v39_v9 }
  0x16   :  { %1736 = vmatprep.subr.bf16.mxu0 %v1735_v3  ;;  %v125_v14 = vld [vmem:[%s2119_s1] sm:$0xff]  ;;  %v126_v15 = vld [vmem:[%s2119_s1 + $0x8] sm:$0xff]  ;;  %1763 = vset.pattern.permute.xlu1 %v1854_v16  ;;  %s1856_s1 = smov 64   ;;  %s1857_s11 = smov 88   ;;  %vm825_vm10 = vcmask 130112   ;;  %vm1170_vm11 = vcmask 195712  }
  0x17   :  { %1738 = vmatpush3.bf16.msra.mxu0 %v1735_v3  ;;  %v41_v11 = vsub.s32 0, %v1925_v10  ;;  %vm127_vm2 = vcmp.gt.s32.totalorder %v125_v14, 0  ;;  %vm128_vm3 = vcmp.gt.s32.totalorder %v126_v15, 0  ;;  %1764 = vset.pattern.permute.xlu0 %v1854_v16  ;;  %vm133_vm5 = vcmp.gt.s32.totalorder %v132_v25, %v1925_v10  ;;  %s1858_s12 = smov 120   ;;  %s1859_s13 = smov 56  }
  0x18   :  { %1740 = vmatprep.subr.bf16.mxu0 %v1739_v6  ;;  %v134_v18 = vsel %vm127_vm2, 1, %v1854_v16  ;;  %v135_v21 = vsel %vm128_vm3, 1, %v1854_v16  ;;  %s1860_s14 = smov 80   ;;  %s1861_s15 = smov 112   ;;  %vm1515_vm12 = vcmask 261312  }
  0x19   :  { %v42_v13 = vrot.slane %v1935_v12, %v41_v11  ;;  %137 = vperm.xlu1 %1763, %v134_v18   ;;  %s1862_s16 = smov 48   ;;  %s1863_s17 = smov 72  }
  0x1a   :  { %s1864_s18 = smov 104   ;;  %s1865_s19 = smov 40  }
  0x1b   :  { %1742 = vmatpush3.bf16.msra.mxu0 %v1739_v6  ;;  %s1866_s20 = smov 16   ;;  %s1867_s21 = smov 24  }
  0x1c   :  { %1665 = vmatprep.subr.mxu0 %v1852_v8  ;;  %s1868_s22 = smov [#allocation5]  }
  0x1d   :  { %140 = vperm.xlu1 %1763, %v135_v21   ;;  %s1568_s23 = sshll.u32 %s1868_s22, 4  ;;  %s1569_s23 = int_to_ptr.vmem [resolvable:$true] %s1568_s23 }
  0x1e   :  { %1653 = vmatmul.mubr.msk.f32.vlgmr.msra.gmra.mrb[0].mxu0 %vm43_vm0, %v1919_v7  ;;  %s1823_s24 = scalar_lea.vmem %s1569_s23, 256  ;;  %p1828_p9 = scmp.lt.s32.totalorder %s1569_s23, %s1569_s23 }
  0x1f   :  { %1667 = vmatprep.mubr.msk.f32.mxu0 %vm1853_vm1, %v1852_v8  ;;  %p1824_p8 = scmp.ne.s32.totalorder %s1569_s23, %s1823_s24  ;;  %p1829_p10 = scmp.lt.s32.totalorder %s1823_s24, %s1823_s24 }
  0x21   :  { %p1830_p11 = por %p1829_p10, %p1828_p9 }
  0x23   :  { %p1831_p12 = pnand %p1830_p11, %p1824_p8 }
  0x98   :  { %v138_v26 = vpop.permute.xlu1 %137 }
  0x99   :  { %vm142_vm6 = vcmp.eq.s32.totalorder %v138_v26, 1 }
  0x9a   :  { %vm1963_vm7 = vmor %vm142_vm6, %vm133_vm5 }
  0x9c   :  { %v141_v29 = vpop.permute.xlu1 %140 }
  0x9d   :  { %vm143_vm8 = vcmp.eq.s32.totalorder %v141_v29, 1 }
  0x9e   :  { %vm1970_vm9 = vmor %vm143_vm8, %vm133_vm5 }
  0xf1   :  { %v1654_v17 = vpop.f32.mrb[0].mxu0 }
  0xf2   :  { %v116_v19 = vpop.f32.mrb[1].mxu0  ;;  %v1947_v22 = vadd.f32 %v1654_v17, %v42_v13 }
  0xf3   :  { %v1944_v20 = vadd.f32 %v116_v19, %v42_v13 }
  0xf5   :  { %149 = vrot.lane.b32.xlu0 %v1944_v20, %s1855_s3 }
  0xf9   :  { %227 = vrot.lane.b32.xlu0 %v1947_v22, %s1855_s3 }
 0x167   :  { %v150_v23 = vpop.permute.xlu0 %149 }
 0x168   :  { %1656 = vmatpush3.xpose.msk.msra.mxu1 %vm151_vm4, %v150_v23 }
 0x169   :  { %1660 = vmatprep.subr.mxu1 %v1852_v8 }
 0x16b   :  { %1658 = vmatmul.mubr.msk.f32.vlgmr.msra.gmra.mrb[0].mxu1 %vm151_vm4, %v1944_v20  ;;  %v228_v24 = vpop.permute.xlu0 %227 }
 0x16c   :  { %1661 = vmatpush3.xpose.msk.msra.mxu1 %vm151_vm4, %v228_v24  ;;  %1662 = vmatprep.mubr.msk.f32.mxu1 %vm1853_vm1, %v1852_v8 }
 0x16d   :  { %1670 = vmatprep.subr.mxu1 %v1852_v8 }
 0x16f   :  { %1663 = vmatmul.mubr.msk.f32.vlgmr.msra.gmra.mrb[2].mxu1 %vm151_vm4, %v1947_v22 }
 0x170   :  { %1672 = vmatprep.mubr.msk.f32.mxu1 %vm1853_vm1, %v1852_v8 }
 0x23e   :  { %v222_v28 = vpop.f32.mrb[0].mxu1 }
 0x23f   :  { %v303_v30 = vmul.f32 0.5, %v222_v28  ;;  %v1659_v31 = vpop.f32.mrb[1].mxu1 }
 0x241   :  { %v305_v32 = vsel %vm1963_vm7, 1e-09, %v303_v30 }
 0x242   :  { %v299_v33 = vpop.f32.mrb[2].mxu1  ;;  %v307_v34 = vsel %vm151_vm4, %v305_v32, -inf }
 0x243   :  { %v304_v35 = vmul.f32 0.5, %v299_v33  ;;  %308 = vmax.xlane.f32.xlu0 %v307_v34  ;;  %v1664_v36 = vpop.f32.mrb[3].mxu1 }
 0x245   :  { %v306_v38 = vsel %vm1970_vm9, 1e-09, %v304_v35 }
 0x246   :  { %v310_v39 = vsel %vm151_vm4, %v306_v38, -inf }
 0x247   :  { %311 = vmax.xlane.f32.xlu1 %v310_v39 }
 0x258   :  { %329 = vrot.lane.b32.xlu1 %v1944_v20, %s1856_s1 }
 0x259   :  { %405 = vrot.lane.b32.xlu0 %v1947_v22, %s1856_s1 }
 0x25c   :  { %485 = vrot.lane.b32.xlu1 %v1944_v20, %s1857_s11 }
 0x260   :  { %563 = vrot.lane.b32.xlu1 %v1947_v22, %s1857_s11 }
 0x264   :  { %561 = vrot.lane.b32.xlu1 %v1947_v22, %s1858_s12 }
 0x2d0   :  { %v309_v40 = vpop.xlane.xlu0 %308 }
 0x2d1   :  { %v313_v41 = vsub.f32 %v305_v32, %v309_v40 }
 0x2d3   :  { %v315_v42 = vmul.f32 1.442695, %v313_v41 }
 0x2d4   :  { %v312_v43 = vpop.xlane.xlu1 %311  ;;  %v406_v44 = vpop.permute.xlu0 %405 }
 0x2d5   :  { %1765 = vpow2.f32 %v315_v42  ;;  %v314_v45 = vsub.f32 %v306_v38, %v312_v43  ;;  %1671 = vmatpush3.msra.mxu1 %v406_v44 }
 0x2d6   :  { %1680 = vmatprep.subr.mxu1 %v1852_v8 }
 0x2d7   :  { %v317_v46 = vmul.f32 1.442695, %v314_v45 }
 0x2d8   :  { %v330_v47 = vpop.permute.xlu1 %329 }
 0x2d9   :  { %1767 = vpow2.f32 %v317_v46  ;;  %1666 = vmatpush3.msra.mxu0 %v330_v47 }
 0x2da   :  { %1675 = vmatprep.subr.mxu0 %v1852_v8 }
 0x2dc   :  { %v486_v54 = vpop.permute.xlu1 %485 }
 0x2df   :  { %v1766_v48 = vpop.eup %1765 }
 0x2e0   :  { %v319_v49 = vsel %vm151_vm4, %v1766_v48, 0.0  ;;  %v564_v58 = vpop.permute.xlu1 %563 }
 0x2e1   :  { %320 = vadd.xlane.f32.xlu0 %v319_v49 }
 0x2e3   :  { %v1768_v50 = vpop.eup %1767 }
 0x2e4   :  { %v322_v51 = vsel %vm151_vm4, %v1768_v50, 0.0  ;;  %v562_v61 = vpop.permute.xlu1 %561 }
 0x2e5   :  { %323 = vadd.xlane.f32.xlu0 %v322_v51 }
 0x2fb   :  { %483 = vrot.lane.b32.xlu0 %v1944_v20, %s1858_s12 }
 0x36e   :  { %v321_v52 = vpop.xlane.xlu0 %320 }
 0x36f   :  { %1769 = vrcp.f32 %v321_v52 }
 0x372   :  { %v324_v53 = vpop.xlane.xlu0 %323 }
 0x373   :  { %1771 = vrcp.f32 %v324_v53 }
 0x376   :  { %v484_v60 = vpop.permute.xlu0 %483 }
 0x379   :  { %v1770_v55 = vpop.eup %1769 }
 0x37a   :  { %v327_v56 = vmul.f32 %v1770_v55, %v1766_v48 }
 0x37c   :  { %1668 = vmatmul.mubr.msk.f32.vlgmr.msra.gmra.mrb[2].mxu0 %vm151_vm4, %v327_v56 }
 0x37d   :  { %v1772_v57 = vpop.eup %1771  ;;  %1676 = vmatpush3.xpose.msk.msra.mxu0 %vm151_vm4, %v486_v54  ;;  %1677 = vmatprep.mubr.msk.f32.mxu0 %vm1853_vm1, %v1852_v8 }
 0x37e   :  { %v328_v59 = vmul.f32 %v1772_v57, %v1768_v50  ;;  %1685 = vmatprep.subr.mxu0 %v1852_v8 }
 0x380   :  { %1673 = vmatmul.mubr.msk.f32.vlgmr.msra.gmra.mrb[4].mxu1 %vm151_vm4, %v328_v59  ;;  %1678 = vmatmul.mubr.msk.f32.vlgmr.msra.gmra.mrb[4].mxu0 %vm151_vm4, %v484_v60 }
 0x381   :  { %1681 = vmatpush3.xpose.msk.msra.mxu1 %vm151_vm4, %v564_v58  ;;  %1682 = vmatprep.mubr.msk.f32.mxu1 %vm1853_vm1, %v1852_v8 }
 0x382   :  { %1690 = vmatprep.subr.mxu1 %v1852_v8  ;;  %1687 = vmatprep.mubr.msk.f32.mxu0 %vm1853_vm1, %v1852_v8 }
 0x384   :  { %1683 = vmatmul.mubr.msk.f32.vlgmr.msra.gmra.mrb[6].mxu1 %vm151_vm4, %v562_v61 }
 0x385   :  { %1692 = vmatprep.mubr.msk.f32.mxu1 %vm1853_vm1, %v1852_v8 }
 0x44f   :  { %v401_v62 = vpop.f32.mrb[2].mxu0 }
 0x450   :  { %481 = vst.msk [vmem:[#allocation5] sm:$0xff] %vm151_vm4, %v401_v62  ;;  %v1669_v63 = vpop.f32.mrb[3].mxu0 }
 0x453   :  { %v477_v0 = vpop.f32.mrb[4].mxu1  ;;  %v557_v1 = vpop.f32.mrb[4].mxu0 }
 0x454   :  { %482 = vst.msk [vmem:[#allocation5 + $0x8] sm:$0xff] %vm151_vm4, %v477_v0  ;;  %v639_v2 = vmul.f32 0.5, %v557_v1  ;;  %v1674_v3 = vpop.f32.mrb[5].mxu1  ;;  %v1679_v4 = vpop.f32.mrb[5].mxu0 }
 0x456   :  { %v641_v6 = vsel %vm1963_vm7, 1e-09, %v639_v2 }
 0x457   :  { %v635_v9 = vpop.f32.mrb[6].mxu1  ;;  %v643_v11 = vsel %vm151_vm4, %v641_v6, -inf }
 0x458   :  { %v640_v13 = vmul.f32 0.5, %v635_v9  ;;  %v1684_v14 = vpop.f32.mrb[7].mxu1  ;;  %644 = vmax.xlane.f32.xlu0 %v643_v11 }
 0x45a   :  { %v642_v15 = vsel %vm1970_vm9, 1e-09, %v640_v13 }
 0x45b   :  { %v646_v16 = vsel %vm151_vm4, %v642_v15, -inf }
 0x45c   :  { %647 = vmax.xlane.f32.xlu1 %v646_v16 }
 0x46d   :  { %665 = vrot.lane.b32.xlu1 %v1944_v20, %s1859_s13 }
 0x46e   :  { %741 = vrot.lane.b32.xlu0 %v1947_v22, %s1859_s13 }
 0x471   :  { %830 = vrot.lane.b32.xlu1 %v1944_v20, %s1860_s14 }
 0x475   :  { %908 = vrot.lane.b32.xlu1 %v1947_v22, %s1860_s14 }
 0x479   :  { %906 = vrot.lane.b32.xlu1 %v1947_v22, %s1861_s15 }
 0x4e5   :  { %v645_v17 = vpop.xlane.xlu0 %644 }
 0x4e6   :  { %v649_v18 = vsub.f32 %v641_v6, %v645_v17 }
 0x4e8   :  { %v651_v19 = vmul.f32 1.442695, %v649_v18 }
 0x4e9   :  { %v648_v21 = vpop.xlane.xlu1 %647  ;;  %v742_v23 = vpop.permute.xlu0 %741 }
 0x4ea   :  { %1773 = vpow2.f32 %v651_v19  ;;  %v650_v24 = vsub.f32 %v642_v15, %v648_v21  ;;  %1691 = vmatpush3.msra.mxu1 %v742_v23 }
 0x4eb   :  { %1700 = vmatprep.subr.mxu1 %v1852_v8 }
 0x4ec   :  { %v653_v25 = vmul.f32 1.442695, %v650_v24 }
 0x4ed   :  { %v666_v26 = vpop.permute.xlu1 %665 }
 0x4ee   :  { %1775 = vpow2.f32 %v653_v25  ;;  %1686 = vmatpush3.msra.mxu0 %v666_v26 }
 0x4ef   :  { %1695 = vmatprep.subr.mxu0 %v1852_v8 }
 0x4f1   :  { %v831_v34 = vpop.permute.xlu1 %830 }
 0x4f4   :  { %v1774_v28 = vpop.eup %1773 }
 0x4f5   :  { %v655_v29 = vsel %vm151_vm4, %v1774_v28, 0.0  ;;  %v909_v39 = vpop.permute.xlu1 %908 }
 0x4f6   :  { %656 = vadd.xlane.f32.xlu0 %v655_v29 }
 0x4f8   :  { %v1776_v30 = vpop.eup %1775 }
 0x4f9   :  { %v658_v31 = vsel %vm151_vm4, %v1776_v30, 0.0  ;;  %v907_v42 = vpop.permute.xlu1 %906 }
 0x4fa   :  { %659 = vadd.xlane.f32.xlu0 %v658_v31 }
 0x510   :  { %828 = vrot.lane.b32.xlu0 %v1944_v20, %s1861_s15 }
 0x583   :  { %v657_v32 = vpop.xlane.xlu0 %656 }
 0x584   :  { %1777 = vrcp.f32 %v657_v32 }
 0x587   :  { %v660_v33 = vpop.xlane.xlu0 %659 }
 0x588   :  { %1779 = vrcp.f32 %v660_v33 }
 0x58b   :  { %v829_v41 = vpop.permute.xlu0 %828 }
 0x58e   :  { %v1778_v35 = vpop.eup %1777 }
 0x58f   :  { %v663_v36 = vmul.f32 %v1778_v35, %v1774_v28 }
 0x591   :  { %1688 = vmatmul.mubr.msk.f32.vlgmr.msra.gmra.mrb[6].mxu0 %vm151_vm4, %v663_v36 }
 0x592   :  { %v1780_v38 = vpop.eup %1779  ;;  %1696 = vmatpush3.xpose.msk.msra.mxu0 %vm151_vm4, %v831_v34  ;;  %1697 = vmatprep.mubr.msk.f32.mxu0 %vm1853_vm1, %v1852_v8 }
 0x593   :  { %v664_v40 = vmul.f32 %v1780_v38, %v1776_v30  ;;  %1705 = vmatprep.subr.mxu0 %v1852_v8 }
 0x595   :  { %1693 = vmatmul.mubr.msk.f32.vlgmr.msra.gmra.mrb[8].mxu1 %vm151_vm4, %v664_v40  ;;  %1698 = vmatmul.mubr.msk.f32.vlgmr.msra.gmra.mrb[8].mxu0 %vm151_vm4, %v829_v41 }
 0x596   :  { %1701 = vmatpush3.xpose.msk.msra.mxu1 %vm151_vm4, %v909_v39  ;;  %1702 = vmatprep.mubr.msk.f32.mxu1 %vm1853_vm1, %v1852_v8 }
 0x597   :  { %1710 = vmatprep.subr.mxu1 %v1852_v8  ;;  %1707 = vmatprep.mubr.msk.f32.mxu0 %vm1853_vm1, %v1852_v8 }
 0x599   :  { %1703 = vmatmul.mubr.msk.f32.vlgmr.msra.gmra.mrb[10].mxu1 %vm151_vm4, %v907_v42 }
 0x59a   :  { %1712 = vmatprep.mubr.msk.f32.mxu1 %vm1853_vm1, %v1852_v8 }
 0x664   :  { %v2037_v43 = vpop.f32.mrb[6].mxu0 }
 0x665   :  { %v1689_v44 = vpop.f32.mrb[7].mxu0 }
 0x668   :  { %v2039_v45 = vpop.f32.mrb[8].mxu1  ;;  %v902_v46 = vpop.f32.mrb[8].mxu0 }
 0x669   :  { %v984_v47 = vmul.f32 0.5, %v902_v46  ;;  %v1694_v48 = vpop.f32.mrb[9].mxu1  ;;  %v1699_v49 = vpop.f32.mrb[9].mxu0 }
 0x66b   :  { %v986_v50 = vsel %vm1963_vm7, 1e-09, %v984_v47 }
 0x66c   :  { %v980_v51 = vpop.f32.mrb[10].mxu1  ;;  %v988_v52 = vsel %vm151_vm4, %v986_v50, -inf }
 0x66d   :  { %v985_v53 = vmul.f32 0.5, %v980_v51  ;;  %v1704_v54 = vpop.f32.mrb[11].mxu1  ;;  %989 = vmax.xlane.f32.xlu0 %v988_v52 }
 0x66f   :  { %v987_v55 = vsel %vm1970_vm9, 1e-09, %v985_v53 }
 0x670   :  { %v991_v56 = vsel %vm151_vm4, %v987_v55, -inf }
 0x671   :  { %992 = vmax.xlane.f32.xlu1 %v991_v56 }
 0x682   :  { %1010 = vrot.lane.b32.xlu1 %v1944_v20, %s1862_s16 }
 0x683   :  { %1086 = vrot.lane.b32.xlu0 %v1947_v22, %s1862_s16 }
 0x686   :  { %1175 = vrot.lane.b32.xlu1 %v1944_v20, %s1863_s17 }
 0x68a   :  { %1253 = vrot.lane.b32.xlu1 %v1947_v22, %s1863_s17 }
 0x68e   :  { %1251 = vrot.lane.b32.xlu1 %v1947_v22, %s1864_s18 }
 0x6fa   :  { %v990_v57 = vpop.xlane.xlu0 %989 }
 0x6fb   :  { %v994_v58 = vsub.f32 %v986_v50, %v990_v57 }
 0x6fd   :  { %v996_v59 = vmul.f32 1.442695, %v994_v58 }
 0x6fe   :  { %v993_v60 = vpop.xlane.xlu1 %992  ;;  %v1087_v61 = vpop.permute.xlu0 %1086 }
 0x6ff   :  { %1781 = vpow2.f32 %v996_v59  ;;  %v995_v62 = vsub.f32 %v987_v55, %v993_v60  ;;  %1711 = vmatpush3.msra.mxu1 %v1087_v61 }
 0x700   :  { %1720 = vmatprep.subr.mxu1 %v1852_v8 }
 0x701   :  { %v998_v63 = vmul.f32 1.442695, %v995_v62 }
 0x702   :  { %v1011_v0 = vpop.permute.xlu1 %1010 }
 0x703   :  { %1783 = vpow2.f32 %v998_v63  ;;  %1706 = vmatpush3.msra.mxu0 %v1011_v0 }
 0x704   :  { %1715 = vmatprep.subr.mxu0 %v1852_v8 }
 0x706   :  { %v1176_v11 = vpop.permute.xlu1 %1175 }
 0x709   :  { %v1782_v1 = vpop.eup %1781 }
 0x70a   :  { %v1000_v2 = vsel %vm151_vm4, %v1782_v1, 0.0  ;;  %v1254_v16 = vpop.permute.xlu1 %1253 }
 0x70b   :  { %1001 = vadd.xlane.f32.xlu0 %v1000_v2 }
 0x70d   :  { %v1784_v3 = vpop.eup %1783 }
 0x70e   :  { %v1003_v4 = vsel %vm151_vm4, %v1784_v3, 0.0  ;;  %v1252_v19 = vpop.permute.xlu1 %1251 }
 0x70f   :  { %1004 = vadd.xlane.f32.xlu0 %v1003_v4 }
 0x725   :  { %1173 = vrot.lane.b32.xlu0 %v1944_v20, %s1864_s18 }
 0x798   :  { %v1002_v6 = vpop.xlane.xlu0 %1001 }
 0x799   :  { %1785 = vrcp.f32 %v1002_v6 }
 0x79c   :  { %v1005_v9 = vpop.xlane.xlu0 %1004 }
 0x79d   :  { %1787 = vrcp.f32 %v1005_v9 }
 0x7a0   :  { %v1174_v18 = vpop.permute.xlu0 %1173 }
 0x7a3   :  { %v1786_v13 = vpop.eup %1785 }
 0x7a4   :  { %v1008_v14 = vmul.f32 %v1786_v13, %v1782_v1 }
 0x7a6   :  { %1708 = vmatmul.mubr.msk.f32.vlgmr.msra.gmra.mrb[10].mxu0 %vm151_vm4, %v1008_v14 }
 0x7a7   :  { %v1788_v15 = vpop.eup %1787  ;;  %1716 = vmatpush3.xpose.msk.msra.mxu0 %vm151_vm4, %v1176_v11  ;;  %1717 = vmatprep.mubr.msk.f32.mxu0 %vm1853_vm1, %v1852_v8 }
 0x7a8   :  { %v1009_v17 = vmul.f32 %v1788_v15, %v1784_v3  ;;  %1725 = vmatprep.subr.mxu0 %v1852_v8 }
 0x7aa   :  { %1713 = vmatmul.mubr.msk.f32.vlgmr.msra.gmra.mrb[12].mxu1 %vm151_vm4, %v1009_v17  ;;  %1718 = vmatmul.mubr.msk.f32.vlgmr.msra.gmra.mrb[12].mxu0 %vm151_vm4, %v1174_v18 }
 0x7ab   :  { %1721 = vmatpush3.xpose.msk.msra.mxu1 %vm151_vm4, %v1254_v16  ;;  %1722 = vmatprep.mubr.msk.f32.mxu1 %vm1853_vm1, %v1852_v8 }
 0x7ac   :  { %1730 = vmatprep.subr.mxu1 %v1852_v8  ;;  %1727 = vmatprep.mubr.msk.f32.mxu0 %vm1853_vm1, %v1852_v8 }
 0x7ae   :  { %1723 = vmatmul.mubr.msk.f32.vlgmr.msra.gmra.mrb[14].mxu1 %vm151_vm4, %v1252_v19 }
 0x7af   :  { %1732 = vmatprep.mubr.msk.f32.mxu1 %vm1853_vm1, %v1852_v8 }
 0x879   :  { %v1082_v21 = vpop.f32.mrb[10].mxu0 }
 0x87a   :  { %v1709_v23 = vpop.f32.mrb[11].mxu0 }
 0x87d   :  { %v1158_v24 = vpop.f32.mrb[12].mxu1  ;;  %v1247_v25 = vpop.f32.mrb[12].mxu0 }
 0x87e   :  { %v1329_v26 = vmul.f32 0.5, %v1247_v25  ;;  %v1714_v28 = vpop.f32.mrb[13].mxu1  ;;  %v1719_v29 = vpop.f32.mrb[13].mxu0  ;;  %v1557_v25 = vsub.s32 2, %v1925_v10 }
 0x880   :  { %v1331_v30 = vsel %vm1963_vm7, 1e-09, %v1329_v26  ;;  %v1558_v29 = vrot.slane %v1935_v12, %v1557_v25 }
 0x881   :  { %v1325_v31 = vpop.f32.mrb[14].mxu1  ;;  %v1333_v32 = vsel %vm151_vm4, %v1331_v30, -inf }
 0x882   :  { %v1330_v33 = vmul.f32 0.5, %v1325_v31  ;;  %v1724_v34 = vpop.f32.mrb[15].mxu1  ;;  %1334 = vmax.xlane.f32.xlu0 %v1333_v32 }
 0x884   :  { %v1332_v35 = vsel %vm1970_vm9, 1e-09, %v1330_v33 }
 0x885   :  { %v1336_v8 = vsel %vm151_vm4, %v1332_v35, -inf }
 0x886   :  { %1337 = vmax.xlane.f32.xlu1 %v1336_v8 }
 0x897   :  { %1355 = vrot.lane.b32.xlu1 %v1944_v20, %s1865_s19 }
 0x89b   :  { %819 = vrot.lane.b32.xlu1 %v2037_v43, %s1851_s26 }
 0x89f   :  { %821 = vrot.lane.b32.xlu1 %v2039_v45, %s1851_s26 }
 0x8a3   :  { %1166 = vrot.lane.b32.xlu1 %v1158_v24, %s1866_s20  ;;  %v1551_v24 = vsub.s32 1, %v1925_v10 }
 0x8a5   :  { %v1552_v26 = vrot.slane %v1935_v12, %v1551_v24 }
 0x90f   :  { %v1335_v27 = vpop.xlane.xlu0 %1334 }
 0x910   :  { %v1339_v36 = vsub.f32 %v1331_v30, %v1335_v27 }
 0x912   :  { %v1341_v38 = vmul.f32 1.442695, %v1339_v36 }
 0x913   :  { %v1338_v39 = vpop.xlane.xlu1 %1337 }
 0x914   :  { %1789 = vpow2.f32 %v1341_v38  ;;  %v1340_v37 = vsub.f32 %v1332_v35, %v1338_v39 }
 0x916   :  { %v1343_v40 = vmul.f32 1.442695, %v1340_v37 }
 0x917   :  { %v1356_v41 = vpop.permute.xlu1 %1355 }
 0x918   :  { %1791 = vpow2.f32 %v1343_v40  ;;  %1726 = vmatpush3.msra.mxu0 %v1356_v41 }
 0x91b   :  { %v820_v20 = vpop.permute.xlu1 %819 }
 0x91c   :  { %826 = vst.msk [vmem:[#allocation5] sm:$0xff] %vm825_vm10, %v820_v20 }
 0x91e   :  { %v1790_v42 = vpop.eup %1789 }
 0x91f   :  { %v822_v43 = vpop.permute.xlu1 %821  ;;  %v1345_v44 = vsel %vm151_vm4, %v1790_v42, 0.0 }
 0x920   :  { %827 = vst.msk [vmem:[#allocation5 + $0x8] sm:$0xff] %vm825_vm10, %v822_v43  ;;  %1346 = vadd.xlane.f32.xlu0 %v1345_v44 }
 0x922   :  { %v1792_v45 = vpop.eup %1791 }
 0x923   :  { %v1167_v46 = vpop.permute.xlu1 %1166  ;;  %v1348_v47 = vsel %vm151_vm4, %v1792_v45, 0.0 }
 0x924   :  { %1172 = vst.msk [vmem:[#allocation5 + $0x8] sm:$0xff] %vm1170_vm11, %v1167_v46  ;;  %1349 = vadd.xlane.f32.xlu0 %v1348_v47 }
 0x93a   :  { %1431 = vrot.lane.b32.xlu0 %v1947_v22, %s1865_s19 }
 0x93e   :  { %1164 = vrot.lane.b32.xlu0 %v1082_v21, %s1866_s20 }
 0x9ad   :  { %v1347_v48 = vpop.xlane.xlu0 %1346 }
 0x9ae   :  { %1793 = vrcp.f32 %v1347_v48 }
 0x9b1   :  { %v1350_v49 = vpop.xlane.xlu0 %1349 }
 0x9b2   :  { %1795 = vrcp.f32 %v1350_v49 }
 0x9b5   :  { %v1432_v50 = vpop.permute.xlu0 %1431 }
 0x9b6   :  { %1731 = vmatpush3.msra.mxu1 %v1432_v50 }
 0x9b8   :  { %v1794_v51 = vpop.eup %1793 }
 0x9b9   :  { %v1353_v52 = vmul.f32 %v1794_v51, %v1790_v42  ;;  %v1165_v53 = vpop.permute.xlu0 %1164 }
 0x9ba   :  { %1171 = vst.msk [vmem:[#allocation5] sm:$0xff] %vm1170_vm11, %v1165_v53 }
 0x9bb   :  { %1728 = vmatmul.mubr.msk.f32.vlgmr.msra.gmra.mrb[14].mxu0 %vm151_vm4, %v1353_v52 }
 0x9bc   :  { %v1796_v54 = vpop.eup %1795 }
 0x9bd   :  { %v1354_v55 = vmul.f32 %v1796_v54, %v1792_v45 }
 0x9bf   :  { %1733 = vmatmul.mubr.msk.f32.vlgmr.msra.gmra.mrb[16].mxu1 %vm151_vm4, %v1354_v55 }
 0xa8e   :  { %v1427_v56 = vpop.f32.mrb[14].mxu0 }
 0xa8f   :  { %1509 = vrot.lane.b32.xlu0 %v1427_v56, %s1867_s21  ;;  %v1729_v22 = vpop.f32.mrb[15].mxu0 }
 0xa92   :  { %v1503_v57 = vpop.f32.mrb[16].mxu1 }
 0xa93   :  { %1511 = vrot.lane.b32.xlu1 %v1503_v57, %s1867_s21  ;;  %v1734_v58 = vpop.f32.mrb[17].mxu1 }
 0xb01   :  { %v1510_v59 = vpop.permute.xlu0 %1509 }
 0xb02   :  { %1516 = vst.msk [vmem:[#allocation5] sm:$0xff] %vm1515_vm12, %v1510_v59 }
 0xb05   :  { %v1512_v60 = vpop.permute.xlu1 %1511 }
 0xb06   :  { %1517 = vst.msk [vmem:[#allocation5 + $0x8] sm:$0xff] %vm1515_vm12, %v1512_v60 }
 0xb09   :  { %v1518_v61 = vld [vmem:[#allocation5] sm:$0xff] }
 0xb0a   :  { %v1520_v62 = vadd.f32 %v1518_v61, %v1912_v5 }
 0xb0c   :  { %v1522_v63 = vsel %vm43_vm0, %v1520_v62, 0.0 }
 0xb0d   :  { %1523 = vadd.xlane.f32.xlu0 %v1522_v63  ;;  %v1519_v0 = vld [vmem:[#allocation5 + $0x8] sm:$0xff] }
 0xb0e   :  { %v1521_v1 = vadd.f32 %v1519_v0, %v1919_v7 }
 0xb10   :  { %v1525_v2 = vsel %vm43_vm0, %v1521_v1, 0.0 }
 0xb11   :  { %1526 = vadd.xlane.f32.xlu1 %v1525_v2 }
 0xb9a   :  { %v1524_v3 = vpop.xlane.xlu0 %1523 }
 0xb9b   :  { %v1529_v4 = vmul.f32 0.03125, %v1524_v3 }
 0xb9d   :  { %v1531_v6 = vsub.f32 %v1520_v62, %v1529_v4 }
 0xb9e   :  { %v1527_v9 = vpop.xlane.xlu1 %1526 }
 0xb9f   :  { %v1530_v11 = vmul.f32 0.03125, %v1527_v9  ;;  %v1533_v13 = vmul.f32 %v1531_v6, %v1531_v6 }
 0xba1   :  { %v1532_v14 = vsub.f32 %v1521_v1, %v1530_v11  ;;  %v1535_v15 = vsel %vm43_vm0, %v1533_v13, 0.0 }
 0xba2   :  { %1536 = vadd.xlane.f32.xlu0 %v1535_v15 }
 0xba3   :  { %v1534_v5 = vmul.f32 %v1532_v14, %v1532_v14 }
 0xba5   :  { %v1538_v16 = vsel %vm43_vm0, %v1534_v5, 0.0 }
 0xba6   :  { %1539 = vadd.xlane.f32.xlu0 %v1538_v16 }
 0xc2f   :  { %v1537_v17 = vpop.xlane.xlu0 %1536 }
 0xc30   :  { %v1541_v18 = vmul.f32 0.03125, %v1537_v17 }
 0xc32   :  { %v1543_v7 = vadd.f32 1e-05, %v1541_v18 }
 0xc33   :  { %v1540_v19 = vpop.xlane.xlu0 %1539 }
 0xc34   :  { %1797 = vrsqrt.f32 %v1543_v7  ;;  %v1542_v21 = vmul.f32 0.03125, %v1540_v19 }
 0xc36   :  { %v1544_v23 = vadd.f32 1e-05, %v1542_v21 }
 0xc38   :  { %1799 = vrsqrt.f32 %v1544_v23 }
 0xc3e   :  { %v1798_v28 = vpop.eup %1797 }
 0xc3f   :  { %v1547_v30 = vmul.f32 %v1798_v28, %v1531_v6 }
 0xc41   :  { %v1553_v31 = vmul.f32 %v1552_v26, %v1547_v30 }
 0xc42   :  { %v1800_v32 = vpop.eup %1799 }
 0xc43   :  { %v1548_v33 = vmul.f32 %v1800_v32, %v1532_v14  ;;  %v1559_v34 = vadd.f32 %v1558_v29, %v1553_v31 }
 0xc45   :  { %v1554_v35 = vmul.f32 %v1552_v26, %v1548_v33  ;;  %1561 = vst.msk [vmem:[#allocation5] sm:$0xff] %vm43_vm0, %v1559_v34 }
 0xc47   :  { %v1560_v8 = vadd.f32 %v1558_v29, %v1554_v35 }
 0xc49   :  { %1562 = vst.msk [vmem:[#allocation5 + $0x8] sm:$0xff] %vm43_vm0, %v1560_v8 }
 0xc4a   :  { %1834 = shalt.err (!%p1831_p12)
}
 0xc4b   :  { %s1835_s29 = scalar_lea.hbm %s2122_s4, 256 }
 0xc4c   :  { %p1836_p13 = scmp.ne.s32.totalorder %s2122_s4, %s1835_s29  ;;  %p1839_p0 = scmp.lt.u32.totalorder %s1835_s29, %s2122_s4 }
 0xc4e   :  { %p1841_p1 = pnand %p1839_p0, %p1836_p13 }
 0xc50   :  { %1844 = shalt.err (!%p1841_p1)
}
 0xc51   :  { %1574 = dma.vmem_to_hbm [thread:$0]  %s1569_s23, 256, %s2122_s4, [#allocation4], %s1850_s25, %s1850_s25, %s1851_s26  }
 0xc52   :  { %1847 = dma.done.wait [#allocation4], 256  }
 0xc53   :  { %1848 = vsyncadd [#allocation4], 4294967040 }
 0xc54   :  { %1578 = vsyncpa [#allocation3], 1 }
 0xc55   :  { %1579 = vsyncpa [#allocation4], 1 }

</bundles_post_ra>
